<compile_context>
chip_gen: v5e
topology: v5e:2x2
jax: 0.10.0
libtpu: 0.0.40
codegen_flags: <defaults>
</compile_context>

<pallas_src>
import functools

import jax
import jax.numpy as jnp
from jax.experimental import pallas as pl
from jax.experimental.pallas import tpu as pltpu

LANE = 128                      # padded lane width for every channel-like dim
VMEM_LIMIT = 32 * 1024 * 1024   # safe on v5e/v6e (128 MiB phys) and v7x (64 MiB)


def _compiler_params(sem):
    return pltpu.CompilerParams(dimension_semantics=sem,
                                vmem_limit_bytes=VMEM_LIMIT)


# ---------------------------------------------------------------------------
# Fused front end: conv1 + ReLU + MaxPool(2,2) + conv2 + ReLU + fc
# ---------------------------------------------------------------------------
def _frontend_kernel(xe_ref, xo_ref, w1_ref, b1_ref, w2_ref, b2_ref,
                     wfc_ref, bfc_ref, o_ref):
    f32 = jnp.float32
    bf16 = jnp.bfloat16
    xe = xe_ref[0].astype(bf16)          # (L2+1, Cin): padded-input rows 0,2,4,..
    xo = xo_ref[0].astype(bf16)          # (L2+1, Cin): padded-input rows 1,3,5,..
    L2 = xe.shape[0] - 1

    def mm(a, b):
        return jnp.dot(a, b, preferred_element_type=f32)

    w1k = [w1_ref[k] for k in range(3)]  # 3 x (Cin, 128) bf16 conv1 taps
    # conv1 evaluated only at positions that survive MaxPool(2,2):
    #   even outputs use padded rows (2i, 2i+1, 2i+2); odd use (2i+1, 2i+2, 2i+3)
    y_even = mm(xe[:L2], w1k[0]) + mm(xo[:L2], w1k[1]) + mm(xe[1:], w1k[2])
    y_odd = mm(xo[:L2], w1k[0]) + mm(xe[1:], w1k[1]) + mm(xo[1:], w1k[2])
    # maxpool + bias + relu (relu/max commute; bias is position independent)
    yp = jnp.maximum(jnp.maximum(y_even, y_odd) + b1_ref[...], 0.0)   # (L2, 128)

    # conv2 (k=3, pad=1) over the pooled sequence, again as 3 shifted matmuls
    zrow = jnp.zeros((1, yp.shape[1]), f32)
    ypad = jnp.concatenate([zrow, yp, zrow], axis=0).astype(bf16)     # (L2+2, 128)
    y2 = (mm(ypad[0:L2], w2_ref[0]) + mm(ypad[1:L2 + 1], w2_ref[1])
          + mm(ypad[2:L2 + 2], w2_ref[2]) + b2_ref[...])
    y2 = jnp.maximum(y2, 0.0).astype(bf16)                            # (L2, 128)

    # fc (permute(0,2,1) is implicit: rows are (t), channels on lanes)
    h = mm(y2, wfc_ref[...]) + bfc_ref[...]                           # (L2, 128)
    o_ref[0] = h.astype(o_ref.dtype)


def frontend(xe, xo, w1, b1, w2, b2, wfc, bfc):
    B, L2p1, cin = xe.shape
    L2 = L2p1 - 1
    hp = wfc.shape[1]
    flops = 2 * B * L2 * (2 * 3 * cin * w1.shape[2]
                          + 3 * w2.shape[1] * w2.shape[2]
                          + wfc.shape[0] * hp)
    bytes_acc = int(2 * xe.size * 4 + (w1.size + w2.size + wfc.size) * 2
                    + B * L2 * hp * 4)
    return pl.pallas_call(
        _frontend_kernel,
        out_shape=jax.ShapeDtypeStruct((B, L2, hp), jnp.float32),
        grid=(B,),
        in_specs=[
            pl.BlockSpec((1, L2p1, cin), lambda b: (b, 0, 0)),
            pl.BlockSpec((1, L2p1, cin), lambda b: (b, 0, 0)),
            pl.BlockSpec(w1.shape, lambda b: (0, 0, 0)),
            pl.BlockSpec(b1.shape, lambda b: (0, 0)),
            pl.BlockSpec(w2.shape, lambda b: (0, 0, 0)),
            pl.BlockSpec(b2.shape, lambda b: (0, 0)),
            pl.BlockSpec(wfc.shape, lambda b: (0, 0)),
            pl.BlockSpec(bfc.shape, lambda b: (0, 0)),
        ],
        out_specs=pl.BlockSpec((1, L2, hp), lambda b: (b, 0, 0)),
        compiler_params=_compiler_params(("parallel",)),
        cost_estimate=pl.CostEstimate(flops=int(flops), transcendentals=0,
                                      bytes_accessed=bytes_acc),
    )(xe, xo, w1, b1, w2, b2, wfc, bfc)


# ---------------------------------------------------------------------------
# Row-tiled matmul helpers (bf16 operands, f32 accumulation, fused bias)
# ---------------------------------------------------------------------------
def _mm_kernel(x_ref, w_ref, b_ref, o_ref):
    acc = jnp.dot(x_ref[...].astype(jnp.bfloat16), w_ref[...],
                  preferred_element_type=jnp.float32)
    o_ref[...] = (acc + b_ref[...]).astype(o_ref.dtype)


def matmul_bias(x, w, b, tile_m=256):
    """(M,K) @ (K,N) + (1,N); N is a multiple of 128 (lane-dense stores)."""
    M, K = x.shape
    N = w.shape[1]
    assert N % LANE == 0
    tm = M if M <= tile_m else tile_m
    flops = 2 * M * K * N
    bytes_acc = int(M * K * x.dtype.itemsize + K * N * 2 + M * N * 4)
    return pl.pallas_call(
        _mm_kernel,
        out_shape=jax.ShapeDtypeStruct((M, N), jnp.float32),
        grid=(pl.cdiv(M, tm),),
        in_specs=[
            pl.BlockSpec((tm, K), lambda i: (i, 0)),
            pl.BlockSpec((K, N), lambda i: (0, 0)),
            pl.BlockSpec((1, N), lambda i: (0, 0)),
        ],
        out_specs=pl.BlockSpec((tm, N), lambda i: (i, 0)),
        compiler_params=_compiler_params(("parallel",)),
        cost_estimate=pl.CostEstimate(flops=int(flops), transcendentals=0,
                                      bytes_accessed=bytes_acc),
    )(x, w, b)


def _mm2_kernel(x1_ref, x2_ref, w1_ref, w2_ref, b_ref, o_ref):
    acc = jnp.dot(x1_ref[...].astype(jnp.bfloat16), w1_ref[...],
                  preferred_element_type=jnp.float32)
    acc = acc + jnp.dot(x2_ref[...].astype(jnp.bfloat16), w2_ref[...],
                        preferred_element_type=jnp.float32)
    o_ref[...] = (acc + b_ref[...]).astype(o_ref.dtype)


def matmul2_bias(x1, x2, w1, w2, b, tile_m=256):
    """x1@w1 + x2@w2 + b  — avoids materialising concat([x1, x2], -1) in HBM."""
    M, K1 = x1.shape
    K2 = x2.shape[1]
    N = w1.shape[1]
    assert N % LANE == 0 and w2.shape[1] == N
    tm = M if M <= tile_m else tile_m
    flops = 2 * M * (K1 + K2) * N
    bytes_acc = int(M * (K1 + K2) * 4 + (K1 + K2) * N * 2 + M * N * 4)
    return pl.pallas_call(
        _mm2_kernel,
        out_shape=jax.ShapeDtypeStruct((M, N), jnp.float32),
        grid=(pl.cdiv(M, tm),),
        in_specs=[
            pl.BlockSpec((tm, K1), lambda i: (i, 0)),
            pl.BlockSpec((tm, K2), lambda i: (i, 0)),
            pl.BlockSpec((K1, N), lambda i: (0, 0)),
            pl.BlockSpec((K2, N), lambda i: (0, 0)),
            pl.BlockSpec((1, N), lambda i: (0, 0)),
        ],
        out_specs=pl.BlockSpec((tm, N), lambda i: (i, 0)),
        compiler_params=_compiler_params(("parallel",)),
        cost_estimate=pl.CostEstimate(flops=int(flops), transcendentals=0,
                                      bytes_accessed=bytes_acc),
    )(x1, x2, w1, w2, b)


# ---------------------------------------------------------------------------
# Fused bidirectional GRU recurrence (both directions in one kernel)
# ---------------------------------------------------------------------------
def _bigru_kernel(xp_ref, whh_ref, bhh_ref, of_ref, ob_ref, *, hp):
    """xp_ref : (T, BP, 6*hp) f32  precomputed x@W_ih + b_ih
                 lanes [0,3hp)  = fwd gates (r|z|n, each hp-wide block)
                 lanes [3hp,6hp)= bwd gates
       whh_ref: (2, hp, 3*hp) bf16, bhh_ref: (2, 1, 3*hp) f32
       of_ref : (T, BP, hp) fwd hidden, ob_ref: (T, BP, hp) bwd hidden."""
    T = xp_ref.shape[0]
    bp = xp_ref.shape[1]
    # load weights/biases once; reused every timestep
    whh_f = whh_ref[0]
    whh_b = whh_ref[1]
    bhh_f = bhh_ref[0]
    bhh_b = bhh_ref[1]

    def gru_cell(gx, gh, h):
        r = jax.nn.sigmoid(gx[:, :hp] + gh[:, :hp])
        z = jax.nn.sigmoid(gx[:, hp:2 * hp] + gh[:, hp:2 * hp])
        n = jnp.tanh(gx[:, 2 * hp:] + r * gh[:, 2 * hp:])
        return (1.0 - z) * n + z * h

    def step(t, carry):
        h_f, h_b = carry
        tb = T - 1 - t
        gx_f = xp_ref[t][:, :3 * hp]          # fwd gates at time t
        gx_b = xp_ref[tb][:, 3 * hp:]         # bwd gates at time T-1-t
        gh_f = jnp.dot(h_f.astype(jnp.bfloat16), whh_f,
                       preferred_element_type=jnp.float32) + bhh_f
        gh_b = jnp.dot(h_b.astype(jnp.bfloat16), whh_b,
                       preferred_element_type=jnp.float32) + bhh_b
        h_f = gru_cell(gx_f, gh_f, h_f)
        h_b = gru_cell(gx_b, gh_b, h_b)
        of_ref[t] = h_f.astype(of_ref.dtype)   # dense (8,128) store
        ob_ref[tb] = h_b.astype(ob_ref.dtype)  # dense (8,128) store
        return h_f, h_b

    h0 = jnp.zeros((bp, hp), jnp.float32)
    jax.lax.fori_loop(0, T, step, (h0, h0), unroll=2)


def bigru_layer(xp, whh, bhh, hp):
    T, bp, _ = xp.shape
    out_sds = jax.ShapeDtypeStruct((T, bp, hp), jnp.float32)
    flops = 2 * 2 * T * bp * hp * 3 * hp
    bytes_acc = int(xp.size * 4 + whh.size * 2 + bhh.size * 4
                    + 2 * T * bp * hp * 4)
    return pl.pallas_call(
        functools.partial(_bigru_kernel, hp=hp),
        out_shape=(out_sds, out_sds),
        grid=(1,),   # recurrence is inherently sequential; whole seq fits VMEM
        in_specs=[
            pl.BlockSpec(xp.shape, lambda i: (0, 0, 0)),
            pl.BlockSpec(whh.shape, lambda i: (0, 0, 0)),
            pl.BlockSpec(bhh.shape, lambda i: (0, 0, 0)),
        ],
        out_specs=(pl.BlockSpec((T, bp, hp), lambda i: (0, 0, 0)),
                   pl.BlockSpec((T, bp, hp), lambda i: (0, 0, 0))),
        compiler_params=_compiler_params(("arbitrary",)),
        cost_estimate=pl.CostEstimate(flops=int(flops),
                                      transcendentals=int(6 * T * bp * hp),
                                      bytes_accessed=bytes_acc),
    )(xp, whh, bhh)


# ---------------------------------------------------------------------------
# Parameter construction (PyTorch-shaped raw params -> padded, bf16, lane-dense)
# ---------------------------------------------------------------------------
def init_raw_params(key, input_size, hidden, num_layers, output_size):
    def nrm(k, shape, scale=0.1):
        return scale * jax.random.normal(k, shape, dtype=jnp.float32)

    keys = iter(jax.random.split(key, 8 + num_layers * 8))
    p = {
        "conv1_w": nrm(next(keys), (32, input_size, 3)),
        "conv1_b": nrm(next(keys), (32,)),
        "conv2_w": nrm(next(keys), (64, 32, 3)),
        "conv2_b": nrm(next(keys), (64,)),
        "fc_w": nrm(next(keys), (hidden, 64)),
        "fc_b": nrm(next(keys), (hidden,)),
        "out_w": nrm(next(keys), (output_size, 2 * hidden)),
        "out_b": nrm(next(keys), (output_size,)),
        "gru": [],
    }
    for l in range(num_layers):
        in_l = hidden if l == 0 else 2 * hidden
        layer = {}
        for d in ("fwd", "bwd"):
            layer[d] = {
                "w_ih": nrm(next(keys), (3 * hidden, in_l)),
                "w_hh": nrm(next(keys), (3 * hidden, hidden)),
                "b_ih": nrm(next(keys), (3 * hidden,)),
                "b_hh": nrm(next(keys), (3 * hidden,)),
            }
        p["gru"].append(layer)
    return p


def pack_params(raw, input_size, hidden, num_layers, output_size):
    """Zero-pad every output-channel dim to 128 lanes, cast matmul weights to
    bf16, merge GRU directions/gates into lane-aligned 128-wide blocks."""
    assert hidden <= LANE and output_size <= LANE
    f32, bf16 = jnp.float32, jnp.bfloat16
    H = hidden
    p = {}

    w1 = jnp.zeros((3, input_size, LANE), f32)
    for k in range(3):
        w1 = w1.at[k, :, :32].set(raw["conv1_w"][:, :, k].T)
    p["w1"] = w1.astype(bf16)
    p["b1"] = jnp.zeros((1, LANE), f32).at[0, :32].set(raw["conv1_b"])

    w2 = jnp.zeros((3, LANE, LANE), f32)
    for k in range(3):
        w2 = w2.at[k, :32, :64].set(raw["conv2_w"][:, :, k].T)
    p["w2"] = w2.astype(bf16)
    p["b2"] = jnp.zeros((1, LANE), f32).at[0, :64].set(raw["conv2_b"])

    wfc = jnp.zeros((LANE, LANE), f32).at[:64, :H].set(raw["fc_w"].T)
    p["wfc"] = wfc.astype(bf16)
    p["bfc"] = jnp.zeros((1, LANE), f32).at[0, :H].set(raw["fc_b"])

    gru = []
    for l in range(num_layers):
        lr = raw["gru"][l]
        whh = jnp.zeros((2, LANE, 3 * LANE), f32)
        bhh = jnp.zeros((2, 1, 3 * LANE), f32)
        bih = jnp.zeros((1, 6 * LANE), f32)
        for d, name in enumerate(("fwd", "bwd")):
            for g in range(3):
                whh = whh.at[d, :H, g * LANE:g * LANE + H].set(
                    lr[name]["w_hh"][g * H:(g + 1) * H, :].T)
                bhh = bhh.at[d, 0, g * LANE:g * LANE + H].set(
                    lr[name]["b_hh"][g * H:(g + 1) * H])
                col = (d * 3 + g) * LANE
                bih = bih.at[0, col:col + H].set(
                    lr[name]["b_ih"][g * H:(g + 1) * H])
        entry = {"whh": whh.astype(bf16), "bhh": bhh, "bih": bih}
        if l == 0:
            wih = jnp.zeros((LANE, 6 * LANE), f32)
            for d, name in enumerate(("fwd", "bwd")):
                for g in range(3):
                    col = (d * 3 + g) * LANE
                    wih = wih.at[:H, col:col + H].set(
                        lr[name]["w_ih"][g * H:(g + 1) * H, :].T)
            entry["wih"] = wih.astype(bf16)
        else:
            wih_f = jnp.zeros((LANE, 6 * LANE), f32)   # multiplies prev fwd h
            wih_b = jnp.zeros((LANE, 6 * LANE), f32)   # multiplies prev bwd h
            for d, name in enumerate(("fwd", "bwd")):
                for g in range(3):
                    col = (d * 3 + g) * LANE
                    wih_f = wih_f.at[:H, col:col + H].set(
                        lr[name]["w_ih"][g * H:(g + 1) * H, :H].T)
                    wih_b = wih_b.at[:H, col:col + H].set(
                        lr[name]["w_ih"][g * H:(g + 1) * H, H:].T)
            entry["wih_f"] = wih_f.astype(bf16)
            entry["wih_b"] = wih_b.astype(bf16)
        gru.append(entry)
    p["gru"] = gru

    wout_f = jnp.zeros((LANE, LANE), f32).at[:H, :output_size].set(
        raw["out_w"][:, :H].T)
    wout_b = jnp.zeros((LANE, LANE), f32).at[:H, :output_size].set(
        raw["out_w"][:, H:].T)
    p["wout_f"] = wout_f.astype(bf16)
    p["wout_b"] = wout_b.astype(bf16)
    p["bout"] = jnp.zeros((1, LANE), f32).at[0, :output_size].set(raw["out_b"])
    return p


# ---------------------------------------------------------------------------
# Forward pass
# ---------------------------------------------------------------------------
def forward(packed, x, hidden, num_layers, output_size):
    B, _, L = x.shape
    L2 = L // 2
    T = L2
    BP = ((B + 7) // 8) * 8   # batch padded to 8 sublanes for the recurrence

    # Input layout prep (tiny, once): NCL -> NLC, pad time by 1, de-interleave
    # even/odd rows so the fused front end uses only contiguous slices.
    x_nlc = jnp.transpose(x, (0, 2, 1)).astype(jnp.float32)
    xpad = jnp.pad(x_nlc, ((0, 0), (1, 1), (0, 0)))
    xe = xpad[:, 0:2 * L2 + 1:2, :]      # (B, L2+1, Cin) rows 0,2,4,...
    xo = xpad[:, 1:2 * L2 + 2:2, :]      # (B, L2+1, Cin) rows 1,3,5,...

    seq = frontend(xe, xo, packed["w1"], packed["b1"], packed["w2"],
                   packed["b2"], packed["wfc"], packed["bfc"])   # (B, T, 128)
    hp = seq.shape[-1]

    # ---- GRU layer 0: merged fwd+bwd input projection over B*T rows ----
    g0 = packed["gru"][0]
    xp = matmul_bias(seq.reshape(B * T, hp), g0["wih"], g0["bih"])   # (B*T, 768)
    # single tiny relayout to time-major, batch-padded layout (T, BP, 768)
    xp = jnp.transpose(xp.reshape(B, T, 6 * hp), (1, 0, 2))
    xp = jnp.pad(xp, ((0, 0), (0, BP - B), (0, 0)))
    hf, hb = bigru_layer(xp, g0["whh"], g0["bhh"], hp)               # (T, BP, 128)

    # ---- remaining layers: everything stays time-major, no transposes ----
    for l in range(1, num_layers):
        gl = packed["gru"][l]
        xp = matmul2_bias(hf.reshape(T * BP, hp), hb.reshape(T * BP, hp),
                          gl["wih_f"], gl["wih_b"], gl["bih"])
        xp = xp.reshape(T, BP, 6 * hp)
        hf, hb = bigru_layer(xp, gl["whh"], gl["bhh"], hp)

    # ---- output head ----
    out = matmul2_bias(hf.reshape(T * BP, hp), hb.reshape(T * BP, hp),
                       packed["wout_f"], packed["wout_b"], packed["bout"])
    out = out.reshape(T, BP, LANE)[:, :B, :output_size]
    return jnp.transpose(out, (1, 0, 2))   # (B, L//2, output_size)


if __name__ == "__main__":
    key = jax.random.PRNGKey(0)
    B, Cin, L = 2, 4, 16
    hidden, num_layers, output_size, n_windows = 32, 2, 5, 8  # n_windows unused in forward

    kx, kp = jax.random.split(key)
    x = jax.random.normal(kx, (B, Cin, L), dtype=jnp.float32)
    raw = init_raw_params(kp, Cin, hidden, num_layers, output_size)
    packed = pack_params(raw, Cin, hidden, num_layers, output_size)

    y = forward(packed, x, hidden, num_layers, output_size)
    y = jax.block_until_ready(y)

    assert y.shape == (B, L // 2, output_size), y.shape
    assert bool(jnp.all(jnp.isfinite(y)))
    print("KERNEL_OK")
</pallas_src>

<mosaic_0001>
module attributes {stable_mosaic.version = 11 : i64} {
  func.func @_frontend_kernel(%arg0: i32, %arg1: memref<1x9x4xf32, #tpu.memory_space<vmem>>, %arg2: memref<1x9x4xf32, #tpu.memory_space<vmem>>, %arg3: memref<3x4x128xbf16, #tpu.memory_space<vmem>>, %arg4: memref<1x128xf32, #tpu.memory_space<vmem>>, %arg5: memref<3x128x128xbf16, #tpu.memory_space<vmem>>, %arg6: memref<1x128xf32, #tpu.memory_space<vmem>>, %arg7: memref<128x128xbf16, #tpu.memory_space<vmem>>, %arg8: memref<1x128xf32, #tpu.memory_space<vmem>>, %arg9: memref<1x8x128xf32, #tpu.memory_space<vmem>>) attributes {dimension_semantics = [#tpu.dimension_semantics<parallel>], iteration_bounds = array<i64: 2>, scalar_prefetch = 0 : i64, scratch_operands = 0 : i64, tpu.core_type = #tpu.core_type<tc>, window_params = [{transform_indices = @transform_0, window_bounds = array<i64: 1, 9, 4>}, {transform_indices = @transform_1, window_bounds = array<i64: 1, 9, 4>}, {pipeline_mode = #tpu.pipeline_mode<synchronous>, transform_indices = @transform_2, window_bounds = array<i64: 3, 4, 128>}, {pipeline_mode = #tpu.pipeline_mode<synchronous>, transform_indices = @transform_3, window_bounds = array<i64: 1, 128>}, {pipeline_mode = #tpu.pipeline_mode<synchronous>, transform_indices = @transform_4, window_bounds = array<i64: 3, 128, 128>}, {pipeline_mode = #tpu.pipeline_mode<synchronous>, transform_indices = @transform_5, window_bounds = array<i64: 1, 128>}, {pipeline_mode = #tpu.pipeline_mode<synchronous>, transform_indices = @transform_6, window_bounds = array<i64: 128, 128>}, {pipeline_mode = #tpu.pipeline_mode<synchronous>, transform_indices = @transform_7, window_bounds = array<i64: 1, 128>}, {transform_indices = @transform_8, window_bounds = array<i64: 1, 8, 128>}]} {
    %c0 = arith.constant 0 : index
    %c0_0 = arith.constant 0 : index
    %c0_1 = arith.constant 0 : index
    %0 = vector.load %arg1[%c0, %c0_0, %c0_1] : memref<1x9x4xf32, #tpu.memory_space<vmem>>, vector<1x9x4xf32>
    %1 = vector.shape_cast %0 : vector<1x9x4xf32> to vector<9x4xf32>
    %2 = arith.truncf %1 : vector<9x4xf32> to vector<9x4xbf16>
    %c0_2 = arith.constant 0 : index
    %c0_3 = arith.constant 0 : index
    %c0_4 = arith.constant 0 : index
    %3 = vector.load %arg2[%c0_2, %c0_3, %c0_4] : memref<1x9x4xf32, #tpu.memory_space<vmem>>, vector<1x9x4xf32>
    %4 = vector.shape_cast %3 : vector<1x9x4xf32> to vector<9x4xf32>
    %5 = arith.truncf %4 : vector<9x4xf32> to vector<9x4xbf16>
    %c0_5 = arith.constant 0 : index
    %c0_6 = arith.constant 0 : index
    %c0_7 = arith.constant 0 : index
    %6 = vector.load %arg3[%c0_5, %c0_6, %c0_7] : memref<3x4x128xbf16, #tpu.memory_space<vmem>>, vector<1x4x128xbf16>
    %7 = vector.shape_cast %6 : vector<1x4x128xbf16> to vector<4x128xbf16>
    %c1 = arith.constant 1 : index
    %c0_8 = arith.constant 0 : index
    %c0_9 = arith.constant 0 : index
    %8 = vector.load %arg3[%c1, %c0_8, %c0_9] : memref<3x4x128xbf16, #tpu.memory_space<vmem>>, vector<1x4x128xbf16>
    %9 = vector.shape_cast %8 : vector<1x4x128xbf16> to vector<4x128xbf16>
    %c2 = arith.constant 2 : index
    %c0_10 = arith.constant 0 : index
    %c0_11 = arith.constant 0 : index
    %10 = vector.load %arg3[%c2, %c0_10, %c0_11] : memref<3x4x128xbf16, #tpu.memory_space<vmem>>, vector<1x4x128xbf16>
    %11 = vector.shape_cast %10 : vector<1x4x128xbf16> to vector<4x128xbf16>
    %12 = vector.extract_strided_slice %2 {offsets = [0, 0], sizes = [8, 4], strides = [1, 1]} : vector<9x4xbf16> to vector<8x4xbf16>
    %cst = arith.constant dense<0.000000e+00> : vector<8x128xf32>
    %13 = tpu.matmul %12, %7, %cst {dimension_numbers = #tpu.dot_dimension_numbers<[1], [0], [0], [1], [0, 0, 1, 1], [], []>} : vector<8x4xbf16>, vector<4x128xbf16>, vector<8x128xf32> -> vector<8x128xf32>
    %14 = vector.extract_strided_slice %5 {offsets = [0, 0], sizes = [8, 4], strides = [1, 1]} : vector<9x4xbf16> to vector<8x4xbf16>
    %cst_12 = arith.constant dense<0.000000e+00> : vector<8x128xf32>
    %15 = tpu.matmul %14, %9, %cst_12 {dimension_numbers = #tpu.dot_dimension_numbers<[1], [0], [0], [1], [0, 0, 1, 1], [], []>} : vector<8x4xbf16>, vector<4x128xbf16>, vector<8x128xf32> -> vector<8x128xf32>
    %16 = arith.addf %13, %15 : vector<8x128xf32>
    %17 = vector.extract_strided_slice %2 {offsets = [1, 0], sizes = [8, 4], strides = [1, 1]} : vector<9x4xbf16> to vector<8x4xbf16>
    %cst_13 = arith.constant dense<0.000000e+00> : vector<8x128xf32>
    %18 = tpu.matmul %17, %11, %cst_13 {dimension_numbers = #tpu.dot_dimension_numbers<[1], [0], [0], [1], [0, 0, 1, 1], [], []>} : vector<8x4xbf16>, vector<4x128xbf16>, vector<8x128xf32> -> vector<8x128xf32>
    %19 = arith.addf %16, %18 : vector<8x128xf32>
    %20 = vector.extract_strided_slice %5 {offsets = [0, 0], sizes = [8, 4], strides = [1, 1]} : vector<9x4xbf16> to vector<8x4xbf16>
    %cst_14 = arith.constant dense<0.000000e+00> : vector<8x128xf32>
    %21 = tpu.matmul %20, %7, %cst_14 {dimension_numbers = #tpu.dot_dimension_numbers<[1], [0], [0], [1], [0, 0, 1, 1], [], []>} : vector<8x4xbf16>, vector<4x128xbf16>, vector<8x128xf32> -> vector<8x128xf32>
    %22 = vector.extract_strided_slice %2 {offsets = [1, 0], sizes = [8, 4], strides = [1, 1]} : vector<9x4xbf16> to vector<8x4xbf16>
    %cst_15 = arith.constant dense<0.000000e+00> : vector<8x128xf32>
    %23 = tpu.matmul %22, %9, %cst_15 {dimension_numbers = #tpu.dot_dimension_numbers<[1], [0], [0], [1], [0, 0, 1, 1], [], []>} : vector<8x4xbf16>, vector<4x128xbf16>, vector<8x128xf32> -> vector<8x128xf32>
    %24 = arith.addf %21, %23 : vector<8x128xf32>
    %25 = vector.extract_strided_slice %5 {offsets = [1, 0], sizes = [8, 4], strides = [1, 1]} : vector<9x4xbf16> to vector<8x4xbf16>
    %cst_16 = arith.constant dense<0.000000e+00> : vector<8x128xf32>
    %26 = tpu.matmul %25, %11, %cst_16 {dimension_numbers = #tpu.dot_dimension_numbers<[1], [0], [0], [1], [0, 0, 1, 1], [], []>} : vector<8x4xbf16>, vector<4x128xbf16>, vector<8x128xf32> -> vector<8x128xf32>
    %27 = arith.addf %24, %26 : vector<8x128xf32>
    %28 = arith.maximumf %19, %27 : vector<8x128xf32>
    %c0_17 = arith.constant 0 : index
    %c0_18 = arith.constant 0 : index
    %29 = vector.load %arg4[%c0_17, %c0_18] : memref<1x128xf32, #tpu.memory_space<vmem>>, vector<1x128xf32>
    %30 = vector.broadcast %29 : vector<1x128xf32> to vector<8x128xf32>
    %31 = arith.addf %28, %30 : vector<8x128xf32>
    %cst_19 = arith.constant 0.000000e+00 : f32
    %32 = vector.broadcast %cst_19 : f32 to vector<8x128xf32>
    %33 = arith.maximumf %31, %32 : vector<8x128xf32>
    %cst_20 = arith.constant 0.000000e+00 : f32
    %34 = vector.broadcast %cst_20 : f32 to vector<1x128xf32>
    %35 = tpu.concatenate %34, %33, %34 in 0 : vector<1x128xf32>, vector<8x128xf32>, vector<1x128xf32> -> vector<10x128xf32>
    %36 = arith.truncf %35 : vector<10x128xf32> to vector<10x128xbf16>
    %37 = vector.extract_strided_slice %36 {offsets = [0, 0], sizes = [8, 128], strides = [1, 1]} : vector<10x128xbf16> to vector<8x128xbf16>
    %c0_21 = arith.constant 0 : index
    %c0_22 = arith.constant 0 : index
    %c0_23 = arith.constant 0 : index
    %38 = vector.load %arg5[%c0_21, %c0_22, %c0_23] : memref<3x128x128xbf16, #tpu.memory_space<vmem>>, vector<1x128x128xbf16>
    %39 = vector.shape_cast %38 : vector<1x128x128xbf16> to vector<128x128xbf16>
    %cst_24 = arith.constant dense<0.000000e+00> : vector<8x128xf32>
    %40 = tpu.matmul %37, %39, %cst_24 {dimension_numbers = #tpu.dot_dimension_numbers<[1], [0], [0], [1], [0, 0, 1, 1], [], []>} : vector<8x128xbf16>, vector<128x128xbf16>, vector<8x128xf32> -> vector<8x128xf32>
    %41 = vector.extract_strided_slice %36 {offsets = [1, 0], sizes = [8, 128], strides = [1, 1]} : vector<10x128xbf16> to vector<8x128xbf16>
    %c1_25 = arith.constant 1 : index
    %c0_26 = arith.constant 0 : index
    %c0_27 = arith.constant 0 : index
    %42 = vector.load %arg5[%c1_25, %c0_26, %c0_27] : memref<3x128x128xbf16, #tpu.memory_space<vmem>>, vector<1x128x128xbf16>
    %43 = vector.shape_cast %42 : vector<1x128x128xbf16> to vector<128x128xbf16>
    %cst_28 = arith.constant dense<0.000000e+00> : vector<8x128xf32>
    %44 = tpu.matmul %41, %43, %cst_28 {dimension_numbers = #tpu.dot_dimension_numbers<[1], [0], [0], [1], [0, 0, 1, 1], [], []>} : vector<8x128xbf16>, vector<128x128xbf16>, vector<8x128xf32> -> vector<8x128xf32>
    %45 = arith.addf %40, %44 : vector<8x128xf32>
    %46 = vector.extract_strided_slice %36 {offsets = [2, 0], sizes = [8, 128], strides = [1, 1]} : vector<10x128xbf16> to vector<8x128xbf16>
    %c2_29 = arith.constant 2 : index
    %c0_30 = arith.constant 0 : index
    %c0_31 = arith.constant 0 : index
    %47 = vector.load %arg5[%c2_29, %c0_30, %c0_31] : memref<3x128x128xbf16, #tpu.memory_space<vmem>>, vector<1x128x128xbf16>
    %48 = vector.shape_cast %47 : vector<1x128x128xbf16> to vector<128x128xbf16>
    %cst_32 = arith.constant dense<0.000000e+00> : vector<8x128xf32>
    %49 = tpu.matmul %46, %48, %cst_32 {dimension_numbers = #tpu.dot_dimension_numbers<[1], [0], [0], [1], [0, 0, 1, 1], [], []>} : vector<8x128xbf16>, vector<128x128xbf16>, vector<8x128xf32> -> vector<8x128xf32>
    %50 = arith.addf %45, %49 : vector<8x128xf32>
    %c0_33 = arith.constant 0 : index
    %c0_34 = arith.constant 0 : index
    %51 = vector.load %arg6[%c0_33, %c0_34] : memref<1x128xf32, #tpu.memory_space<vmem>>, vector<1x128xf32>
    %52 = vector.broadcast %51 : vector<1x128xf32> to vector<8x128xf32>
    %53 = arith.addf %50, %52 : vector<8x128xf32>
    %cst_35 = arith.constant 0.000000e+00 : f32
    %54 = vector.broadcast %cst_35 : f32 to vector<8x128xf32>
    %55 = arith.maximumf %53, %54 : vector<8x128xf32>
    %56 = arith.truncf %55 : vector<8x128xf32> to vector<8x128xbf16>
    %c0_36 = arith.constant 0 : index
    %c0_37 = arith.constant 0 : index
    %57 = vector.load %arg7[%c0_36, %c0_37] : memref<128x128xbf16, #tpu.memory_space<vmem>>, vector<128x128xbf16>
    %cst_38 = arith.constant dense<0.000000e+00> : vector<8x128xf32>
    %58 = tpu.matmul %56, %57, %cst_38 {dimension_numbers = #tpu.dot_dimension_numbers<[1], [0], [0], [1], [0, 0, 1, 1], [], []>} : vector<8x128xbf16>, vector<128x128xbf16>, vector<8x128xf32> -> vector<8x128xf32>
    %c0_39 = arith.constant 0 : index
    %c0_40 = arith.constant 0 : index
    %59 = vector.load %arg8[%c0_39, %c0_40] : memref<1x128xf32, #tpu.memory_space<vmem>>, vector<1x128xf32>
    %60 = vector.broadcast %59 : vector<1x128xf32> to vector<8x128xf32>
    %61 = arith.addf %58, %60 : vector<8x128xf32>
    %c0_41 = arith.constant 0 : index
    %c0_42 = arith.constant 0 : index
    %c0_43 = arith.constant 0 : index
    %62 = vector.load %arg9[%c0_41, %c0_42, %c0_43] : memref<1x8x128xf32, #tpu.memory_space<vmem>>, vector<1x8x128xf32>
    %63 = vector.shape_cast %62 : vector<1x8x128xf32> to vector<8x128xf32>
    %64 = vector.shape_cast %61 : vector<8x128xf32> to vector<1x8x128xf32>
    tpu.vector_store %arg9[%c0_41, %c0_42, %c0_43], %64 {strides = array<i32>} : memref<1x8x128xf32, #tpu.memory_space<vmem>>, vector<1x8x128xf32>,
    return
  }
  func.func @transform_0(%arg0: i32) -> (i32, i32, i32) {
    %c0_i32 = arith.constant 0 : i32
    %c0_i32_0 = arith.constant 0 : i32
    %c0_i32_1 = arith.constant 0 : i32
    return %arg0, %c0_i32, %c0_i32_0 : i32, i32, i32
  }
  func.func @transform_1(%arg0: i32) -> (i32, i32, i32) {
    %c0_i32 = arith.constant 0 : i32
    %c0_i32_0 = arith.constant 0 : i32
    %c0_i32_1 = arith.constant 0 : i32
    return %arg0, %c0_i32, %c0_i32_0 : i32, i32, i32
  }
  func.func @transform_2(%arg0: i32) -> (i32, i32, i32) {
    %c0_i32 = arith.constant 0 : i32
    %c0_i32_0 = arith.constant 0 : i32
    %c0_i32_1 = arith.constant 0 : i32
    %c0_i32_2 = arith.constant 0 : i32
    return %c0_i32, %c0_i32_0, %c0_i32_1 : i32, i32, i32
  }
  func.func @transform_3(%arg0: i32) -> (i32, i32) {
    %c0_i32 = arith.constant 0 : i32
    %c0_i32_0 = arith.constant 0 : i32
    %c0_i32_1 = arith.constant 0 : i32
    return %c0_i32, %c0_i32_0 : i32, i32
  }
  func.func @transform_4(%arg0: i32) -> (i32, i32, i32) {
    %c0_i32 = arith.constant 0 : i32
    %c0_i32_0 = arith.constant 0 : i32
    %c0_i32_1 = arith.constant 0 : i32
    %c0_i32_2 = arith.constant 0 : i32
    return %c0_i32, %c0_i32_0, %c0_i32_1 : i32, i32, i32
  }
  func.func @transform_5(%arg0: i32) -> (i32, i32) {
    %c0_i32 = arith.constant 0 : i32
    %c0_i32_0 = arith.constant 0 : i32
    %c0_i32_1 = arith.constant 0 : i32
    return %c0_i32, %c0_i32_0 : i32, i32
  }
  func.func @transform_6(%arg0: i32) -> (i32, i32) {
    %c0_i32 = arith.constant 0 : i32
    %c0_i32_0 = arith.constant 0 : i32
    %c0_i32_1 = arith.constant 0 : i32
    return %c0_i32, %c0_i32_0 : i32, i32
  }
  func.func @transform_7(%arg0: i32) -> (i32, i32) {
    %c0_i32 = arith.constant 0 : i32
    %c0_i32_0 = arith.constant 0 : i32
    %c0_i32_1 = arith.constant 0 : i32
    return %c0_i32, %c0_i32_0 : i32, i32
  }
  func.func @transform_8(%arg0: i32) -> (i32, i32, i32) {
    %c0_i32 = arith.constant 0 : i32
    %c0_i32_0 = arith.constant 0 : i32
    %c0_i32_1 = arith.constant 0 : i32
    return %arg0, %c0_i32, %c0_i32_0 : i32, i32, i32
  }
}

</mosaic_0001>

<bundles_post_ra>
// kernel: tpu_custom_call.1
= control target key start
LH: loop header
LB: loop body
LE: loop exit
PB: predicated region body
PF: predicated region fallthrough
CT: control target
= control target key end

     0   :  { %13 = vsyncpa [#allocation3], 0  ;;  %s1474_s0 = inlined_call_operand.vmem [shape: f32[2,9,4], index: 0, kind: input, shape index: {}]   ;;  %s1475_s1 = inlined_call_operand.vmem [shape: f32[2,9,4], index: 1, kind: input, shape index: {}]   ;;  %s1476_s2 = inlined_call_operand.vmem [shape: bf16[3,4,128], index: 2, kind: input, shape index: {}]   ;;  %s1477_s3 = inlined_call_operand.vmem [shape: f32[1,128], index: 3, kind: input, shape index: {}]   ;;  %s1478_s4 = inlined_call_operand.hbm [shape: bf16[3,128,128], index: 4, kind: input, shape index: {}]   ;;  %s1479_s5 = inlined_call_operand.vmem [shape: f32[1,128], index: 5, kind: input, shape index: {}]   ;;  %s1480_s6 = inlined_call_operand.vmem [shape: bf16[128,128], index: 6, kind: input, shape index: {}]   ;;  %s1481_s7 = inlined_call_operand.vmem [shape: f32[1,128], index: 7, kind: input, shape index: {}]   ;;  %s1482_s8 = inlined_call_operand.hbm [shape: f32[2,8,128], index: 8, kind: output, shape index: {}]  }
   0x1   :  { %14 = vsyncpa [#allocation4], 0 }
   0x2   :  { %16 = vsyncpa [#allocation4 + $0x1], 0  ;;  %s1325_s27 = smov 0   ;;  %s1327_s28 = smov 0  }
   0x3   :  { %s1329_s29 = smov 0   ;;  %s1331_s30 = smov 0  }
   0x4 LB: > { %s1346_s9 = sadd.s32 4294967295, %s1275_s30   ;;  %s934_s10 = sadd.s32 4294967294, %s1275_s30   ;;  %s1275_s30 = sphi %s1331_s30, %s1488_s30   ;;  %s1271_s29 = sphi %s1329_s29, %s1487_s29   ;;  %s1267_s28 = sphi %s1327_s28, %s1486_s28   ;;  %s1263_s27 = sphi %s1325_s27, %s1485_s27  }
   0x5   : > { %s1350_s11 = sadd.s32 1, %s1275_s30   ;;  %s207_s12 = sadd.s32 1, %s1271_s29 }
   0x6   : > { %s204_s13 = ssub.s32 %s1275_s30, %s1350_s11  ;;  %p217_p0 = scmp.ne.s32.totalorder %s1271_s29, %s1267_s28 }
   0x7   : > { %p205_p1 = scmp.eq.s32.totalorder %s204_s13, 0  ;;  %p218_p2 = scmp.eq.s32.totalorder %s1346_s9, 1 }
   0x8   : > { %p223_p3 = scmp.ne.s32.totalorder %s1267_s28, %s1263_s27  ;;  %p224_p4 = scmp.eq.s32.totalorder %s934_s10, 1 }
   0x9   : > { %s1361_s14 = scalar_select %p205_p1, %s1271_s29, %s207_s12  }
   0xa   : > { %p1363_p5 = por %p218_p2, %p217_p0  ;;  %p1367_p6 = por %p224_p4, %p223_p3 }
   0xb   : > { %p935_p7 = scmp.ge.s32.totalorder %s1275_s30, 1  ;;  %p231_p8 = scmp.lt.s32.totalorder %s1275_s30, 3 }
   0xc   : > { %p1138_p9 = scmp.eq.s32.totalorder %s1346_s9, 0  ;;  %s248_s19 = sshll.u32 %s1478_s4, 4  ;;  %s249_s19 = int_to_ptr.hbm [resolvable:$true] %s248_s19 }
   0xd   : > { %p232_p10 = pnand %p935_p7, %p231_p8  ;;  %s1277_s20 = smov [#allocation2]  }
   0xe   : > { %s250_s21 = sshll.u32 %s1277_s20, 4  ;;  %s1278_s22 = smov 64   ;;  %s251_s21 = int_to_ptr.vmem [resolvable:$true] %s250_s21 }
   0xf   : > { %p1130_p11 = pneg %p232_p10  ;;  %s1279_s23 = smov 4  }
  0x10   : > { %291 = sbr.rel (%p232_p10) target bundleno = 475 (0x1db), region = 52 }
  0x11   : > { %p1131_p12 = pnand %p1138_p9, %p1130_p11 }
  0x13   : > { %1133 = dma.hbm_to_vmem [thread:$0]  (!%p1131_p12), %s249_s19, 3072, %s251_s21, [#allocation3], %s1278_s22, %s1278_s22, %s1279_s23  }
  0x15   : > { %1254 = dma.done.wait (%p1138_p9), [#allocation3], 3072  }
  0x16   : > { %1256 = vsyncadd (%p1138_p9), [#allocation3], 4294964224  ;;  %p331_p13 = scmp.lt.s32.totalorder %s1346_s9, 1  ;;  %vm359_vm0 = vcmask 1041408   ;;  %v945_v0 = vld [vmem:[%s1476_s2 + $0x2] sm:$0x3] }
  0x17   : > { %v350_v1 = vld [vmem:[%s1476_s2] sm:$0x3]  ;;  %v361_v3 = vsel %vm359_vm0, %v945_v0, 0  ;;  %vm355_vm1 = vcmask 31744   ;;  %v946_v11 = vld [vmem:[%s1476_s2 + $0x4] sm:$0x3] }
  0x18   : > { %s332_s24 = scalar_select %p331_p13, %s1346_s9, 1  ;;  %v380_v4 = vsel %vm359_vm0, %v350_v1, 0  ;;  %370 = vmatpush.bf16.msra.mxu0 %v361_v3  ;;  %v411_v14 = vsel %vm359_vm0, %v946_v11, 0  ;;  %434 = vmatpush.bf16.msra.mxu3 %v361_v3  ;;  %v1099_v28 = vld [vmem:[#allocation2 + $0x38] sm:$0xff]  ;;  %v1098_v30 = vld [vmem:[#allocation2 + $0x30] sm:$0xff]  ;;  %v1097_v31 = vld [vmem:[#allocation2 + $0x28] sm:$0xff] }
  0x19   : > { %389 = vmatpush.bf16.msra.mxu1 %v380_v4  ;;  %420 = vmatpush.bf16.msra.mxu2 %v411_v14  ;;  %v1115_v29 = vld [vmem:[#allocation2 + $0xb8] sm:$0xff]  ;;  %v1114_v33 = vld [vmem:[#allocation2 + $0xb0] sm:$0xff]  ;;  %v1096_v34 = vld [vmem:[#allocation2 + $0x20] sm:$0xff]  ;;  %vm492_vm2 = vcmask 1040384   ;;  %s328_s19 = sand.u32 1, %s1267_s28   ;;  %s1087_s20 = sshll.u32 %s1346_s9, 3 }
  0x1a   : > { %s1090_s25 = sshll.u32 %s332_s24, 4  ;;  %v1107_v32 = vld [vmem:[#allocation2 + $0x78] sm:$0xff]  ;;  %v1106_v35 = vld [vmem:[#allocation2 + $0x70] sm:$0xff]  ;;  %v1113_v36 = vld [vmem:[#allocation2 + $0xa8] sm:$0xff]  ;;  %s940_s21 = sshll.u32 %s328_s19, 3 }
  0x1b   : > { %s340_s12 = scalar_lea.vmem %s1475_s1, %s1090_s25  ;;  %s335_s18 = scalar_lea.vmem %s1474_s0, %s1090_s25  ;;  %v1095_v37 = vld [vmem:[#allocation2 + $0x18] sm:$0xff]  ;;  %v1105_v38 = vld [vmem:[#allocation2 + $0x68] sm:$0xff]  ;;  %v1112_v39 = vld [vmem:[#allocation2 + $0xa0] sm:$0xff] }
  0x1c   : > { %v346_v2 = vld [vmem:[%s340_s12] sm:$0xff]  ;;  %v347_v5 = vld [vmem:[%s340_s12 + $0x8] sm:$0x1]  ;;  %447 = vmatpush.bf16.msrb.mxu0 %v380_v4  ;;  %652 = vmatpush.bf16.msrb.mxu3 %v1099_v28  ;;  %v1094_v40 = vld [vmem:[#allocation2 + $0x10] sm:$0xff]  ;;  %s846_s24 = scalar_lea.hbm %s1482_s8, %s1087_s20  ;;  %s330_s10 = scalar_lea.vmem [#allocation5], %s940_s21 }
  0x1d   : > { %v348_v6 = vpack.c.bf16 %v346_v2, %v346_v2  ;;  %v342_v7 = vld [vmem:[%s335_s18] sm:$0xff]  ;;  %v349_v8 = vpack.c.bf16 %v347_v5, %v347_v5  ;;  %v343_v9 = vld [vmem:[%s335_s18 + $0x8] sm:$0x1]  ;;  %475 = vmatpush.bf16.msrb.mxu1 %v411_v14  ;;  %591 = vmatpush.bf16.msrb.mxu2 %v1107_v32  ;;  %v1111_v42 = vld [vmem:[#allocation2 + $0x98] sm:$0xff]  ;;  %s848_s12 = sshll.u32 %s330_s10, 4  ;;  %s850_s13 = sshll.u32 %s846_s24, 4  ;;  %s849_s12 = int_to_ptr.vmem [resolvable:$true] %s848_s12  ;;  %s851_s13 = int_to_ptr.hbm [resolvable:$true] %s850_s13 }
  0x1e   : > { %v344_v10 = vpack.c.bf16 %v342_v7, %v342_v7  ;;  %v345_v13 = vpack.c.bf16 %v343_v9, %v343_v9  ;;  %v1104_v41 = vld [vmem:[#allocation2 + $0x60] sm:$0xff]  ;;  %v1093_v43 = vld [vmem:[#allocation2 + $0x8] sm:$0xff]  ;;  %v1103_v44 = vld [vmem:[#allocation2 + $0x58] sm:$0xff]  ;;  %s836_s17 = scalar_lea.sflag [#allocation4], %s328_s19  ;;  %s1223_s9 = sshra.s32 %s851_s13, 4  ;;  %s1224_s9 = int_to_ptr.hbm [resolvable:$true] %s1223_s9 }
  0x1f   : > { %v455_v12 = vunpack.c.l.b16 %v348_v6  ;;  %v456_v15 = vunpack.c.l.b16 %v349_v8  ;;  %947 = vmatmul.msk.bf16.vlgmr.msra.gmra.mxu0 %vm355_vm1, %v348_v6  ;;  %v1110_v45 = vld [vmem:[#allocation2 + $0x90] sm:$0xff]  ;;  %v1092_v46 = vld [vmem:[#allocation2] sm:$0xff]  ;;  %v1109_v48 = vld [vmem:[#allocation2 + $0x88] sm:$0xff]  ;;  %s1225_s18 = scalar_lea.hbm %s1224_s9, 8  ;;  %s1229_s23 = scalar_lea.hbm %s1482_s8, 16 }
  0x20   : > { %v397_v16 = vunpack.c.l.b16 %v344_v10  ;;  %948 = vmatmul.msk.bf16.vlgmr.msra.gmra.mxu1 %vm355_vm1, %v344_v10  ;;  %v398_v17 = vunpack.c.l.b16 %v345_v13  ;;  %732 = vmatpush.bf16.msra.mxu0 %v1115_v29  ;;  %v1102_v47 = vld [vmem:[#allocation2 + $0x50] sm:$0xff]  ;;  %v1101_v51 = vld [vmem:[#allocation2 + $0x48] sm:$0xff]  ;;  %v1108_v52 = vld [vmem:[#allocation2 + $0x80] sm:$0xff]  ;;  %p1226_p0 = scmp.ne.s32.totalorder %s1224_s9, %s1225_s18  ;;  %p1230_p3 = scmp.lt.s32.totalorder %s1224_s9, %s1482_s8 }
  0x21   : > { %v457_v18 = vpack.c.b16 %v456_v15, %v455_v12  ;;  %653 = vmatpush.bf16.msrb.mxu3 %v1098_v30  ;;  %592 = vmatpush.bf16.msrb.mxu2 %v1106_v35  ;;  %v1100_v53 = vld [vmem:[#allocation2 + $0x40] sm:$0xff]  ;;  %v1123_v56 = vld [vmem:[%s1480_s6 + $0x38] sm:$0xff]  ;;  %v1122_v57 = vld [vmem:[%s1480_s6 + $0x30] sm:$0xff]  ;;  %p1231_p4 = scmp.lt.s32.totalorder %s1229_s23, %s1225_s18 }
  0x22   : > { %v399_v19 = vpack.c.b16 %v398_v17, %v397_v16  ;;  %821 = vmatpush.bf16.msra.mxu1 %v1123_v56  ;;  %v1121_v62 = vld [vmem:[%s1480_s6 + $0x28] sm:$0xff]  ;;  %v1176_v3 = vld [vmem:[%s1477_s3] ss:$0 sm:$0xff]  ;;  %vm1017_vm3 = vmneg %vm492_vm2  ;;  %p1227_p1 = pnand %p1226_p0, %p1363_p5 }
  0x23   : > { %v461_v22 = vshll.u32 %v457_v18, 16  ;;  %v459_v25 = vshrl.u32 %v457_v18, 16  ;;  %vm1019_vm4 = vmpackc.low %vm1017_vm3, %vm1017_vm3  ;;  %v1117_v28 = vld [vmem:[%s1480_s6 + $0x8] sm:$0xff]  ;;  %v1116_v29 = vld [vmem:[%s1480_s6] sm:$0xff]  ;;  %p1232_p7 = por %p1231_p4, %p1230_p3 }
  0x24   : > { %v401_v20 = vshrl.u32 %v399_v19, 16  ;;  %v403_v21 = vshll.u32 %v399_v19, 16  ;;  %733 = vmatpush.bf16.msra.mxu0 %v1114_v33  ;;  %p1228_p2 = pneg %p1227_p1 }
  0x25   : > { %v463_v26 = vrot.slane %v461_v22, 1  ;;  %654 = vmatpush.bf16.msrb.mxu3 %v1097_v31  ;;  %593 = vmatpush.bf16.msrb.mxu2 %v1105_v38 }
  0x26   : > { %v405_v23 = vrot.slane %v403_v21, 1  ;;  %822 = vmatpush.bf16.msra.mxu1 %v1122_v57  ;;  %p1233_p8 = pnand %p1232_p7, %p1228_p2 }
  0x27   : > { %v464_v27 = vor.u32 %v463_v26, %v459_v25  ;;  %v1120_v25 = vld [vmem:[%s1480_s6 + $0x20] sm:$0xff]  ;;  %v1119_v26 = vld [vmem:[%s1480_s6 + $0x18] sm:$0xff] }
  0x28   : > { %v406_v24 = vor.u32 %v405_v23, %v401_v20  ;;  %734 = vmatpush.bf16.msra.mxu0 %v1113_v36  ;;  %v1177_v36 = vld [vmem:[%s1479_s5] ss:$0 sm:$0xff] }
  0x29   : > { %655 = vmatpush.bf16.msrb.mxu3 %v1096_v34  ;;  %594 = vmatpush.bf16.msrb.mxu2 %v1104_v41 }
  0x2a   : > { %949 = vmatmul.msk.bf16.vlgmr.msra.gmra.mxu2 %vm355_vm1, %v406_v24  ;;  %950 = vmatmul.msk.bf16.vlgmr.msra.gmra.mxu3 %vm355_vm1, %v406_v24 }
  0x2b   : > { %823 = vmatpush.bf16.msra.mxu1 %v1121_v62 }
  0x2c   : > { %735 = vmatpush.bf16.msra.mxu0 %v1112_v39 }
  0x2d   : > { %656 = vmatpush.bf16.msrb.mxu3 %v1095_v37  ;;  %595 = vmatpush.bf16.msrb.mxu2 %v1103_v44 }
  0x2f   : > { %951 = vmatmul.msk.bf16.vlgmr.msrb.gmra.mxu0 %vm355_vm1, %v348_v6  ;;  %824 = vmatpush.bf16.msra.mxu1 %v1120_v25 }
  0x30   : > { %952 = vmatmul.msk.bf16.vlgmr.msrb.gmra.mxu1 %vm355_vm1, %v464_v27  ;;  %736 = vmatpush.bf16.msra.mxu0 %v1111_v42  ;;  %v1118_v27 = vld [vmem:[%s1480_s6 + $0x10] sm:$0xff]  ;;  %v1178_v42 = vld [vmem:[%s1481_s7] ss:$0 sm:$0xff] }
  0x31   : > { %657 = vmatpush.bf16.msrb.mxu3 %v1094_v40  ;;  %596 = vmatpush.bf16.msrb.mxu2 %v1102_v47 }
  0x33   : > { %825 = vmatpush.bf16.msra.mxu1 %v1119_v26 }
  0x34   : > { %737 = vmatpush.bf16.msra.mxu0 %v1110_v45 }
  0x35   : > { %658 = vmatpush.bf16.msrb.mxu3 %v1093_v43  ;;  %597 = vmatpush.bf16.msrb.mxu2 %v1101_v51 }
  0x37   : > { %826 = vmatpush.bf16.msra.mxu1 %v1118_v27 }
  0x38   : > { %738 = vmatpush.bf16.msra.mxu0 %v1109_v48 }
  0x39   : > { %659 = vmatpush.bf16.msrb.mxu3 %v1092_v46  ;;  %598 = vmatpush.bf16.msrb.mxu2 %v1100_v53 }
  0x3b   : > { %827 = vmatpush.bf16.msra.mxu1 %v1117_v28 }
  0x3c   : > { %739 = vmatpush.bf16.msra.mxu0 %v1108_v52 }
  0x3f   : > { %828 = vmatpush.bf16.msra.mxu1 %v1116_v29 }
  0x9c   : > { %v372_v49 = vpop.f32.mrf.mxu0 }
  0x9d   : > { %v391_v50 = vpop.f32.mrf.mxu1 }
  0x9e   : > { %v392_v63 = vadd.f32 %v391_v50, %v372_v49 }
  0xa4   : > { %v374_v54 = vpop.f32.mrf.mxu0 }
  0xa5   : > { %v393_v55 = vpop.f32.mrf.mxu1 }
  0xac   : > { %v449_v60 = vpop.f32.mrf.mxu0 }
  0xad   : > { %v422_v58 = vpop.f32.mrf.mxu2  ;;  %v436_v59 = vpop.f32.mrf.mxu3 }
  0xae   : > { %v477_v61 = vpop.f32.mrf.mxu1  ;;  %v450_v0 = vadd.f32 %v449_v60, %v436_v59  ;;  %v426_v1 = vadd.f32 %v422_v58, %v392_v63 }
  0xb0   : > { %v481_v2 = vadd.f32 %v477_v61, %v450_v0 }
  0xb2   : > { %v482_v4 = vmax.f32 %v426_v1, %v481_v2 }
  0xb4   : > { %v487_v5 = vadd.f32 %v1176_v3, %v482_v4  ;;  %v451_v8 = vpop.f32.mrf.mxu0 }
  0xb5   : > { %v424_v6 = vpop.f32.mrf.mxu2  ;;  %v438_v7 = vpop.f32.mrf.mxu3 }
  0xb6   : > { %v479_v9 = vpop.f32.mrf.mxu1  ;;  %v488_v10 = vmax.f32 %v487_v5, 0.0 }
  0xb8   : > { %v490_v11 = vrot.slane %v488_v10, 7 }
  0xba   : > { %v493_v12 = vsel %vm492_vm2, 0.0, %v490_v11  ;;  %v494_v13 = vsel %vm492_vm2, %v490_v11, 0.0  ;;  %v1020_v14 = vpack.c.bf16 %v490_v11, %v490_v11 }
  0xbb   : > { %v495_v15 = vpack.c.bf16 %v493_v12, %v493_v12  ;;  %v496_v16 = vpack.c.bf16 %v494_v13, %v494_v13 }
  0xbc   : > { %1021 = vmatmul.msk.bf16.vlgmr.msrb.gmra.mxu3 %vm1019_vm4, %v1020_v14 }
  0xbd   : > { %v532_v17 = vunpack.c.l.b16 %v495_v15  ;;  %v533_v18 = vunpack.c.l.b16 %v496_v16 }
  0xbf   : > { %v534_v19 = vpack.c.b16 %v533_v18, %v532_v17 }
  0xc1   : > { %v682_v20 = vrot.slane %v534_v19, 1  ;;  %v538_v21 = vshll.u32 %v534_v19, 16  ;;  %v536_v22 = vshrl.u32 %v534_v19, 16 }
  0xc3   : > { %740 = vmatmul.bf16.vlgmr.msra.gmra.mxu0 %v682_v20  ;;  %v540_v23 = vrot.slane %v538_v21, 1 }
  0xc5   : > { %v541_v24 = vor.u32 %v540_v23, %v536_v22 }
  0xc7   : > { %599 = vmatmul.bf16.vlgmr.msrb.gmra.mxu2 %v541_v24 }
 0x13f   : > { %v661_v30 = vpop.f32.mrf.mxu3 }
 0x140   : > { %v741_v31 = vpop.f32.mrf.mxu0 }
 0x147   : > { %v663_v32 = vpop.f32.mrf.mxu3 }
 0x148   : > { %v743_v33 = vpop.f32.mrf.mxu0 }
 0x14a   : > { %v600_v34 = vpop.f32.mrf.mxu2 }
 0x14b   : > { %v662_v35 = vadd.f32 %v661_v30, %v600_v34 }
 0x14d   : > { %v745_v37 = vadd.f32 %v741_v31, %v662_v35 }
 0x14f   : > { %v750_v38 = vadd.f32 %v1177_v36, %v745_v37 }
 0x151   : > { %v751_v39 = vmax.f32 %v750_v38, 0.0 }
 0x152   : > { %v602_v40 = vpop.f32.mrf.mxu2 }
 0x153   : > { %v752_v41 = vpack.c.bf16 %v751_v39, %v751_v39 }
 0x155   : > { %829 = vmatmul.bf16.vlgmr.msra.gmra.mxu1 %v752_v41 }
 0x1d2   : > { %v830_v43 = vpop.f32.mrf.mxu1 }
 0x1d3   : > { %v831_v44 = vadd.f32 %v1178_v42, %v830_v43 }
 0x1d5   : > { %834 = vst [vmem:[%s330_s10] sm:$0xff] %v831_v44 }
 0x1d6   : > { %1236 = shalt.err (!%p1233_p8)
}
 0x1d7   : > { %1128 = dma.vmem_to_hbm [thread:$0]  (%p1363_p5), %s849_s12, 128, %s851_s13, %s836_s17  }
 0x1da   : > { %v832_v45 = vpop.f32.mrf.mxu1 }
 0x1db PF: > { %p1140_p9 = scmp.ge.s32.totalorder %s1275_s30, 2  ;;  %s862_s19 = sand.u32 1, %s1263_s27  }
 0x1dc   : > { %s863_s24 = scalar_lea.sflag [#allocation4], %s862_s19 }
 0x1dd   : > { %p1135_p10 = pnand %p1140_p9, %p1367_p6 }
 0x1df   : > { %p1136_p11 = pneg %p1135_p10 }
 0x1e1   : > { %1258 = dma.done.wait (%p1136_p11), %s863_s24, 128  }
 0x1e2   : > { %1260 = vsyncadd (%p1136_p11), %s863_s24, 4294967168  ;;  %p19_p12 = scmp.ge.s32.totalorder %s1350_s11, 4   ;;  %s1485_s27 = smov %s1267_s28 }
 0x1e3   : > { %s1486_s28 = smov %s1271_s29  ;;  %s1487_s29 = smov %s1361_s14 }
 0x1e4   : > { %s1488_s30 = smov %s1350_s11  ;;  %21 = sbr.rel (!%p19_p12) target bundleno = 4 (0x4), region = 99 }
 0x1e9   :  { %869 = vsyncpa [#allocation3], 1 }
 0x1ea   :  { %871 = vsyncpa [#allocation3 + $0x1], 1 }
 0x1eb   :  { %872 = vsyncpa [#allocation4], 1 }
 0x1ec   :  { %874 = vsyncpa [#allocation4 + $0x1], 1 }

</bundles_post_ra>
